<compile_context>
chip_gen: v7x
topology: tpu7x:2x2x1
jax: 0.10.0
libtpu: 0.0.40
codegen_flags: <defaults>
</compile_context>

<pallas_src>
import jax
import jax.numpy as jnp
import numpy as np
from jax.experimental import pallas as pl
from jax.experimental.pallas import tpu as pltpu


def _mask_filter_kernel(x_ref, mask_ref, o_ref):
    # (TB, D) * (1, D) broadcast multiply — pure VPU work, memory-bound.
    o_ref[...] = x_ref[...] * mask_ref[...]


def make_mask_params(in_size: int, tt: int = 64, aa: int = 128):
    """Deterministic parameter init mirroring maskFilter.__init__."""
    current = np.zeros((in_size,), dtype=np.float32)

    text_mask = current.copy()
    text_mask[:tt] = 1.0
    text_mask = text_mask * 3.0

    audio_mask = current.copy()
    audio_mask[tt:aa] = 1.0
    audio_mask = audio_mask * 2.0

    video_mask = current.copy()
    video_mask[aa:] = 1.0
    video_mask = video_mask * 1.0

    return (
        jnp.asarray(text_mask, dtype=jnp.float32),
        jnp.asarray(audio_mask, dtype=jnp.float32),
        jnp.asarray(video_mask, dtype=jnp.float32),
    )


def _pick_batch_tile(B: int) -> int:
    """Pick the batch tile.

    Small batches: one full-batch block (block == full dim is always a legal
    tiling).  Large batches: the largest tile <= 1024 rows that divides B
    (1024 rows * 192 feats * 4 B = 768 KiB per buffer — comfortably inside the
    default scoped-VMEM limit on every TPU generation even double-buffered for
    input + output), falling back to 1024 with a ragged last tile.
    """
    if B <= 1024:
        return B
    for tb in (1024, 512, 256, 128, 64, 32, 16, 8):
        if B % tb == 0:
            return tb
    return 1024


def mask_filter(features, text_mask, audio_mask, video_mask):
    """features: (B, D) float32; masks: (D,) float32 (disjoint supports)."""
    B, D = features.shape

    # Fold the three disjoint masks into one row once, outside the kernel.
    combined = (text_mask + audio_mask + video_mask).reshape(1, D).astype(features.dtype)

    TB = _pick_batch_tile(B)
    grid = (pl.cdiv(B, TB),)

    return pl.pallas_call(
        _mask_filter_kernel,
        out_shape=jax.ShapeDtypeStruct((B, D), features.dtype),
        grid_spec=pl.GridSpec(
            grid=grid,
            in_specs=[
                pl.BlockSpec((TB, D), lambda i: (i, 0)),   # features tile
                pl.BlockSpec((1, D), lambda i: (0, 0)),    # combined mask row (resident)
            ],
            out_specs=pl.BlockSpec((TB, D), lambda i: (i, 0)),
        ),
        compiler_params=pltpu.CompilerParams(
            dimension_semantics=("parallel",),  # batch tiles are independent
        ),
    )(features, combined)


if __name__ == "__main__":
    in_size = 192  # implied by the (64, 128, 192) split in __init__
    batch = 8

    key = jax.random.PRNGKey(0)
    features = jax.random.normal(key, (batch, in_size), dtype=jnp.float32)

    text_mask, audio_mask, video_mask = make_mask_params(in_size)

    out = mask_filter(features, text_mask, audio_mask, video_mask)
    out = jax.block_until_ready(out)

    # Reference check (plain JAX, same formula as the PyTorch forward).
    ref = features * text_mask + features * audio_mask + features * video_mask
    np.testing.assert_allclose(np.asarray(out), np.asarray(ref), rtol=1e-6, atol=1e-6)

    print("KERNEL_OK")
</pallas_src>

<mosaic_0001>
module attributes {stable_mosaic.version = 11 : i64} {
  func.func @_mask_filter_kernel(%arg0: i32, %arg1: memref<8x192xf32, #tpu.memory_space<vmem>>, %arg2: memref<1x192xf32, #tpu.memory_space<vmem>>, %arg3: memref<8x192xf32, #tpu.memory_space<vmem>>) attributes {dimension_semantics = [#tpu.dimension_semantics<parallel>], iteration_bounds = array<i64: 1>, scalar_prefetch = 0 : i64, scratch_operands = 0 : i64, tpu.core_type = #tpu.core_type<tc>, window_params = [{transform_indices = @transform_0, window_bounds = array<i64: 8, 192>}, {pipeline_mode = #tpu.pipeline_mode<synchronous>, transform_indices = @transform_1, window_bounds = array<i64: 1, 192>}, {transform_indices = @transform_2, window_bounds = array<i64: 8, 192>}]} {
    %c0 = arith.constant 0 : index
    %c0_0 = arith.constant 0 : index
    %0 = vector.load %arg1[%c0, %c0_0] : memref<8x192xf32, #tpu.memory_space<vmem>>, vector<8x192xf32>
    %c0_1 = arith.constant 0 : index
    %c0_2 = arith.constant 0 : index
    %1 = vector.load %arg2[%c0_1, %c0_2] : memref<1x192xf32, #tpu.memory_space<vmem>>, vector<1x192xf32>
    %2 = vector.broadcast %1 : vector<1x192xf32> to vector<8x192xf32>
    %3 = arith.mulf %0, %2 : vector<8x192xf32>
    %c0_3 = arith.constant 0 : index
    %c0_4 = arith.constant 0 : index
    %4 = vector.load %arg3[%c0_3, %c0_4] : memref<8x192xf32, #tpu.memory_space<vmem>>, vector<8x192xf32>
    tpu.vector_store %arg3[%c0_3, %c0_4], %3 {strides = array<i32>} : memref<8x192xf32, #tpu.memory_space<vmem>>, vector<8x192xf32>,
    return
  }
  func.func @transform_0(%arg0: i32) -> (i32, i32) {
    %c0_i32 = arith.constant 0 : i32
    %c0_i32_0 = arith.constant 0 : i32
    return %arg0, %c0_i32 : i32, i32
  }
  func.func @transform_1(%arg0: i32) -> (i32, i32) {
    %c0_i32 = arith.constant 0 : i32
    %c0_i32_0 = arith.constant 0 : i32
    %c0_i32_1 = arith.constant 0 : i32
    return %c0_i32, %c0_i32_0 : i32, i32
  }
  func.func @transform_2(%arg0: i32) -> (i32, i32) {
    %c0_i32 = arith.constant 0 : i32
    %c0_i32_0 = arith.constant 0 : i32
    return %arg0, %c0_i32 : i32, i32
  }
}

</mosaic_0001>

<bundles_post_ra>
// kernel: tpu_custom_call.1
= control target key start
LH: loop header
LB: loop body
LE: loop exit
PB: predicated region body
PF: predicated region fallthrough
CT: control target
= control target key end

     0   :  { %7 = vsyncpa [#allocation3], 0  ;;  %s152_s0 = inlined_call_operand.hbm [shape: f32[8,192], index: 0, kind: input, shape index: {}]   ;;  %s153_s1 = inlined_call_operand.vmem [shape: f32[1,192], index: 1, kind: input, shape index: {}]   ;;  %s154_s2 = inlined_call_operand.hbm [shape: f32[8,192], index: 2, kind: output, shape index: {}]  }
   0x1   :  { %8 = vsyncpa [#allocation4], 0  ;;  %s108_s9 = smov [#allocation2]   ;;  %s60_s13 = scalar_lea.hbm %s152_s0, 256 }
   0x2   :  { %s15_s10 = sshll.u32 %s108_s9, 4  ;;  %p61_p0 = scmp.ne.s32.totalorder %s152_s0, %s60_s13  ;;  %s16_s10 = int_to_ptr.vmem [resolvable:$true] %s15_s10 }
   0x3   :  { %p64_p1 = scmp.lt.u32.totalorder %s60_s13, %s152_s0 }
   0x5   :  { %p66_p2 = pnand %p64_p1, %p61_p0 }
   0x7   :  { %69 = shalt.err (!%p66_p2)
}
   0x8   :  { %s70_s18 = scalar_lea.vmem %s16_s10, 256  ;;  %p75_p4 = scmp.lt.s32.totalorder %s16_s10, %s16_s10 }
   0x9   :  { %p71_p3 = scmp.ne.s32.totalorder %s16_s10, %s70_s18  ;;  %p76_p5 = scmp.lt.s32.totalorder %s70_s18, %s70_s18 }
   0xb   :  { %p77_p6 = por %p76_p5, %p75_p4 }
   0xd   :  { %p78_p7 = pnand %p77_p6, %p71_p3 }
   0xf   :  { %81 = shalt.err (!%p78_p7)
}
  0x10   :  { %18 = dma.hbm_to_vmem [thread:$0]  %s152_s0, 256, %s16_s10, [#allocation3]  }
  0x11   :  { %104 = dma.done.wait [#allocation3], 256  }
  0x12   :  { %105 = vsyncadd [#allocation3], 4294967040  ;;  %v28_v0 = vlaneseq  ;;  %v24_v4 = vld [vmem:[#allocation2] sm:$0xff]  ;;  %v25_v6 = vld [vmem:[#allocation2 + $0x8] sm:$0xff]  ;;  %s109_s23 = smov [#allocation5]   ;;  %vm41_vm0 = vcmask 523264  }
  0x13   :  { %v26_v5 = vld [vmem:[%s153_s1] sm:$0x3]  ;;  %s49_s24 = sshll.u32 %s109_s23, 4  ;;  %s50_s24 = int_to_ptr.vmem [resolvable:$true] %s49_s24 }
  0x14   :  { %v29_v1 = vshrl.u32 %v28_v0, 7  ;;  %s82_s0 = scalar_lea.vmem %s50_s24, 256  ;;  %p87_p9 = scmp.lt.s32.totalorder %s50_s24, %s50_s24 }
  0x15   :  { %p83_p8 = scmp.ne.s32.totalorder %s50_s24, %s82_s0  ;;  %p88_p10 = scmp.lt.s32.totalorder %s82_s0, %s82_s0 }
  0x16   :  { %v30_v2 = vsub.s32 0, %v29_v1  ;;  %v34_v3 = vsub.s32 1, %v29_v1 }
  0x17   :  { %p89_p11 = por %p88_p10, %p87_p9 }
  0x18   :  { %v31_v7 = vrot.slane %v26_v5, %v30_v2  ;;  %v35_v8 = vrot.slane %v26_v5, %v34_v3 }
  0x19   :  { %p90_p12 = pnand %p89_p11, %p83_p8 }
  0x1a   :  { %v38_v9 = vmul.f32 %v31_v7, %v24_v4  ;;  %v39_v10 = vmul.f32 %v35_v8, %v25_v6 }
  0x1c   :  { %40 = vst [vmem:[#allocation5] sm:$0xff] %v38_v9  ;;  %42 = vst.msk [vmem:[#allocation5 + $0x8] sm:$0xff] %vm41_vm0, %v39_v10 }
  0x1d   :  { %93 = shalt.err (!%p90_p12)
}
  0x1e   :  { %s94_s26 = scalar_lea.hbm %s154_s2, 256 }
  0x1f   :  { %p95_p13 = scmp.ne.s32.totalorder %s154_s2, %s94_s26  ;;  %p98_p0 = scmp.lt.u32.totalorder %s94_s26, %s154_s2 }
  0x21   :  { %p100_p1 = pnand %p98_p0, %p95_p13 }
  0x23   :  { %103 = shalt.err (!%p100_p1)
}
  0x24   :  { %52 = dma.vmem_to_hbm [thread:$0]  %s50_s24, 256, %s154_s2, [#allocation4]  }
  0x25   :  { %106 = dma.done.wait [#allocation4], 256  }
  0x26   :  { %107 = vsyncadd [#allocation4], 4294967040 }
  0x27   :  { %56 = vsyncpa [#allocation3], 1 }
  0x28   :  { %57 = vsyncpa [#allocation4], 1 }

</bundles_post_ra>
